<compile_context>
chip_gen: v7x
topology: tpu7x:2x2x1
jax: 0.10.0
libtpu: 0.0.40
codegen_flags: <defaults>
</compile_context>

<pallas_src>
import jax
import jax.numpy as jnp
from jax import lax
from jax.experimental import pallas as pl
from jax.experimental.pallas import tpu as pltpu


def _round_up(x: int, m: int) -> int:
    return ((x + m - 1) // m) * m


def _numerator_kernel(acts_ref, v_ref, num_ref):
    # acts_ref: (TM, S) native dtype, v_ref: (S, 1) matching matmul dtype
    # (resident across grid steps), num_ref: (TM, 1) f32.
    # Native-dtype MXU matvec with f32 accumulation; square on the VPU.
    s = jnp.dot(acts_ref[...], v_ref[...], preferred_element_type=jnp.float32)
    num_ref[...] = s * s


def _vmem_capacity_bytes() -> int:
    try:
        return int(pltpu.get_tpu_info().vmem_capacity_bytes)
    except Exception:
        return 64 * 1024 * 1024  # conservative (v7x per-TC)


def max_data_dim_gnn(
    acts: jax.Array,
    v: jax.Array,
    *,
    tm: int | None = None,
    use_pallas: bool | None = None,
) -> jax.Array:
    """acts: (N, S) float dtype, v: (S,) -> (N,) f32 normalized squares."""
    N, S = acts.shape

    # One-shot v normalization in f32 (rsqrt -> EUP), done in the wrapper.
    v32 = v.astype(jnp.float32)
    v_norm = v32 * lax.rsqrt(jnp.sum(v32 * v32))
    v_col = v_norm.reshape(S, 1)

    # Match the matmul dtype to acts for narrow float types so the kernel
    # feeds the MXU natively (no implicit promotion / upcast inside the body).
    if acts.dtype in (jnp.bfloat16, jnp.float16):
        v_col = v_col.astype(acts.dtype)

    acts_bytes = N * S * acts.dtype.itemsize
    if use_pallas is None:
        # Tiny-input fallback: pallas_call dispatch + per-step overhead would
        # dominate; a plain XLA fusion is strictly faster here.
        use_pallas = acts_bytes >= (256 << 10)

    if not use_pallas:
        num = jnp.matmul(acts, v_col, preferred_element_type=jnp.float32)
        num = jnp.square(num).reshape(N)
        return num / jnp.sum(num)

    # ---- VMEM-layout-aware tile sizing -------------------------------------
    itemsize = acts.dtype.itemsize
    sublane = {4: 8, 2: 16, 1: 32}.get(itemsize, 8)       # sublane packing
    row_bytes_vmem = _round_up(S, 128) * itemsize          # lane padding

    vmem_cap = _vmem_capacity_bytes()
    vmem_limit = int(0.75 * vmem_cap)                      # ~48 MiB v7x, ~96 MiB v5e/v6e
    tile_budget = max(1 << 20, vmem_limit // 4)            # leaves room for 2x buffering + v/out

    if tm is None:
        rows_for_budget = max(sublane, tile_budget // row_bytes_vmem)
        tm = min(_round_up(N, sublane), _round_up(rows_for_budget, sublane))
        # Ensure >= 4 grid steps for large inputs so both v7x TCs get tiles.
        if _round_up(N, sublane) * row_bytes_vmem >= (2 << 20):
            tm = min(tm, max(sublane, _round_up(-(-N // 4), sublane)))
    else:
        tm = min(_round_up(tm, sublane), _round_up(N, sublane))

    grid = (pl.cdiv(N, tm),)

    cost = pl.CostEstimate(
        flops=2 * N * S + 2 * N,
        transcendentals=0,
        bytes_accessed=acts_bytes + N * 4 + S * v_col.dtype.itemsize,
    )

    num = pl.pallas_call(
        _numerator_kernel,
        out_shape=jax.ShapeDtypeStruct((N, 1), jnp.float32),
        grid=grid,
        in_specs=[
            # Stream acts in (tm, S) tiles down the N axis (double buffered).
            pl.BlockSpec((tm, S), lambda i: (i, 0)),
            # v stays resident in VMEM across all grid steps.
            pl.BlockSpec((S, 1), lambda i: (0, 0)),
        ],
        # Output traffic is only N*4 bytes (vs N*S*itemsize of input), so the
        # lane-masked (tm, 1) stores are a negligible fraction of HBM traffic.
        out_specs=pl.BlockSpec((tm, 1), lambda i: (i, 0)),
        compiler_params=pltpu.CompilerParams(
            dimension_semantics=("parallel",),   # megacore-shardable on v7x
            vmem_limit_bytes=vmem_limit,
        ),
        cost_estimate=cost,
    )(acts, v_col)

    num = num.reshape(N)
    # Global finalize in the wrapper: touches only N floats (negligible HBM).
    # TODO(synk): could emit per-tile partial sums from the kernel to shrink
    # this follow-up reduction further; it is ~1% of traffic so skipped.
    denom = jnp.sum(num)
    return num / denom


def _reference(acts, v):
    acts32 = acts.astype(jnp.float32)
    v32 = v.astype(jnp.float32)
    v_norm = v32 / jnp.linalg.norm(v32)
    num = jnp.square(acts32 @ v_norm)
    return num / jnp.sum(num)


if __name__ == "__main__":
    key = jax.random.PRNGKey(0)
    k1, k2, k3, k4, k5, k6 = jax.random.split(key, 6)

    # Case 1: module demo shape (seq=8, size=32) -> tiny-input XLA fallback.
    N1, S1 = 8, 32
    acts1 = jax.random.normal(k1, (N1, S1), dtype=jnp.float32)
    v1 = jax.random.normal(k2, (S1,), dtype=jnp.float32)
    out1 = max_data_dim_gnn(acts1, v1)
    jax.block_until_ready(out1)
    ref1 = _reference(acts1, v1)
    assert out1.shape == (N1,)
    assert jnp.allclose(out1, ref1, rtol=1e-4, atol=1e-6), (out1, ref1)
    assert jnp.allclose(jnp.sum(out1), 1.0, rtol=1e-5)

    # Case 2: multi-tile Pallas path with a ragged tail (masked reads/writes,
    # parallel N-tiling), f32 acts.
    N2, S2 = 1000, 256
    acts2 = jax.random.normal(k3, (N2, S2), dtype=jnp.float32)
    v2 = jax.random.normal(k4, (S2,), dtype=jnp.float32)
    out2 = max_data_dim_gnn(acts2, v2, tm=128, use_pallas=True)  # 8 tiles, last partial
    jax.block_until_ready(out2)
    ref2 = _reference(acts2, v2)
    assert out2.shape == (N2,)
    assert jnp.allclose(out2, ref2, rtol=1e-4, atol=1e-6)
    assert jnp.allclose(jnp.sum(out2), 1.0, rtol=1e-5)

    # Case 3: bf16 acts -> native-dtype MXU path (no in-kernel upcast),
    # auto tile sizing with sublane=16 accounting.
    N3, S3 = 512, 128
    acts3 = jax.random.normal(k5, (N3, S3), dtype=jnp.float32).astype(jnp.bfloat16)
    v3 = jax.random.normal(k6, (S3,), dtype=jnp.float32)
    out3 = max_data_dim_gnn(acts3, v3, use_pallas=True)
    jax.block_until_ready(out3)
    ref3 = _reference(acts3, v3)
    assert out3.shape == (N3,)
    assert jnp.allclose(out3, ref3, rtol=5e-2, atol=1e-5)
    assert jnp.allclose(jnp.sum(out3), 1.0, rtol=1e-3)

    print("KERNEL_OK")
</pallas_src>

<mosaic_0001>
module attributes {stable_mosaic.version = 11 : i64} {
  func.func @_numerator_kernel(%arg0: i32, %arg1: memref<128x256xf32, #tpu.memory_space<vmem>>, %arg2: memref<256x1xf32, #tpu.memory_space<vmem>>, %arg3: memref<128x1xf32, #tpu.memory_space<vmem>>) attributes {dimension_semantics = [#tpu.dimension_semantics<parallel>], iteration_bounds = array<i64: 8>, scalar_prefetch = 0 : i64, scratch_operands = 0 : i64, tpu.core_type = #tpu.core_type<tc>, window_params = [{transform_indices = @transform_0, window_bounds = array<i64: 128, 256>}, {pipeline_mode = #tpu.pipeline_mode<synchronous>, transform_indices = @transform_1, window_bounds = array<i64: 256, 1>}, {transform_indices = @transform_2, window_bounds = array<i64: 128, 1>}]} {
    %c0 = arith.constant 0 : index
    %c0_0 = arith.constant 0 : index
    %0 = vector.load %arg1[%c0, %c0_0] : memref<128x256xf32, #tpu.memory_space<vmem>>, vector<128x256xf32>
    %c0_1 = arith.constant 0 : index
    %c0_2 = arith.constant 0 : index
    %1 = vector.load %arg2[%c0_1, %c0_2] : memref<256x1xf32, #tpu.memory_space<vmem>>, vector<256x1xf32>
    %cst = arith.constant dense<0.000000e+00> : vector<128x1xf32>
    %2 = tpu.matmul %0, %1, %cst {dimension_numbers = #tpu.dot_dimension_numbers<[1], [0], [0], [1], [0, 0, 1, 1], [], []>} : vector<128x256xf32>, vector<256x1xf32>, vector<128x1xf32> -> vector<128x1xf32>
    %3 = arith.mulf %2, %2 : vector<128x1xf32>
    %c0_3 = arith.constant 0 : index
    %c0_4 = arith.constant 0 : index
    %4 = vector.load %arg3[%c0_3, %c0_4] : memref<128x1xf32, #tpu.memory_space<vmem>>, vector<128x1xf32>
    tpu.vector_store %arg3[%c0_3, %c0_4], %3 {strides = array<i32>} : memref<128x1xf32, #tpu.memory_space<vmem>>, vector<128x1xf32>,
    return
  }
  func.func @transform_0(%arg0: i32) -> (i32, i32) {
    %c0_i32 = arith.constant 0 : i32
    %c0_i32_0 = arith.constant 0 : i32
    return %arg0, %c0_i32 : i32, i32
  }
  func.func @transform_1(%arg0: i32) -> (i32, i32) {
    %c0_i32 = arith.constant 0 : i32
    %c0_i32_0 = arith.constant 0 : i32
    %c0_i32_1 = arith.constant 0 : i32
    return %c0_i32, %c0_i32_0 : i32, i32
  }
  func.func @transform_2(%arg0: i32) -> (i32, i32) {
    %c0_i32 = arith.constant 0 : i32
    %c0_i32_0 = arith.constant 0 : i32
    return %arg0, %c0_i32 : i32, i32
  }
}

</mosaic_0001>

<bundles_post_ra>
// kernel: tpu_custom_call.1
= control target key start
LH: loop header
LB: loop body
LE: loop exit
PB: predicated region body
PF: predicated region fallthrough
CT: control target
= control target key end

     0   :  { %7 = vsyncpa [#allocation3], 0  ;;  %s1482_s0 = inlined_call_operand.hbm [shape: f32[1000,256], index: 0, kind: input, shape index: {}]   ;;  %s1483_s1 = inlined_call_operand.vmem [shape: f32[256,1], index: 1, kind: input, shape index: {}]   ;;  %s1484_s2 = inlined_call_operand.vmem [shape: f32[1000,1], index: 2, kind: output, shape index: {}]  }
   0x1   :  { %9 = vsyncpa [#allocation3 + $0x1], 0  ;;  %s1116_s9 = smov 0   ;;  %s1118_s10 = smov 0  }
   0x2   :  { %s1120_s11 = smov 0   ;;  %s1122_s12 = smov 0  }
   0x3 LB: > { %s1135_s13 = sadd.s32 4294967295, %s1064_s12   ;;  %s1138_s14 = sadd.s32 1, %s1064_s12   ;;  %s1064_s12 = sphi %s1122_s12, %s1493_s12   ;;  %s1060_s11 = sphi %s1120_s11, %s1492_s11   ;;  %s1056_s10 = sphi %s1118_s10, %s1491_s10   ;;  %s1052_s9 = sphi %s1116_s9, %s1490_s9  }
   0x4   : > { %s19_s15 = ssub.s32 %s1064_s12, %s1138_s14  ;;  %s22_s16 = sadd.s32 1, %s1060_s11 }
   0x5   : > { %p20_p0 = scmp.eq.s32.totalorder %s19_s15, 0  ;;  %p29_p1 = scmp.ne.s32.totalorder %s1060_s11, %s1056_s10 }
   0x6   : > { %p30_p2 = scmp.eq.s32.totalorder %s1064_s12, 0  ;;  %p35_p3 = scmp.ne.s32.totalorder %s1056_s10, %s1052_s9 }
   0x7   : > { %s1148_s17 = scalar_select %p20_p0, %s1060_s11, %s22_s16  }
   0x8   : > { %p31_p4 = por %p30_p2, %p29_p1  ;;  %p36_p5 = scmp.eq.s32.totalorder %s1135_s13, 0 }
   0x9   : > { %p80_p6 = scmp.eq.s32.totalorder %s1135_s13, 7  ;;  %p707_p9 = scmp.ge.s32.totalorder %s1064_s12, 8 }
   0xa   : > { %p1152_p7 = por %p36_p5, %p35_p3 }
   0xb   : > { %p1156_p8 = por %p80_p6, %p29_p1  ;;  %105 = sbr.rel (%p707_p9) target bundleno = 53 (0x35), region = 20 }
  0x12   : > { %108 = sbr.rel (!%p31_p4) target bundleno = 53 (0x35), region = 24  ;;  %s109_s20 = sand.u32 (%p31_p4), 1, %s1060_s11  }
  0x13   : > { %s709_s21 = sshll.u32 (%p31_p4), %s1064_s12, 4  ;;  %s708_s22 = sshll.u32 (%p31_p4), %s109_s20, 8 }
  0x14   : > { %s115_s23 = ssub.s32 (%p31_p4), 125, %s709_s21  ;;  %s1166_s26 = scalar_lea.sflag (%p31_p4), [#allocation3], %s109_s20 }
  0x15   : > { %p116_p10 = scmp.lt.s32.totalorder (%p31_p4), %s115_s23, 16  ;;  %s113_s27 = scalar_lea.vmem (%p31_p4), [#allocation2], %s708_s22 }
  0x19   : > { %s1495_s23 = smov (!%p116_p10, %s115_s23), 16 }
  0x1a   : > { %s1163_s24 = sshll.u32 %s1495_s23, 8 }
  0x1b   : > { %s121_s25 = ssub.s32 4096, %s1163_s24 }
  0x1c   : > { %122 = vsyncadd %s1166_s26, %s121_s25  ;;  %p712_p11 = scmp.ne.s32.totalorder %s1163_s24, 0  ;;  %s739_s28 = sshll.u32 %s1064_s12, 12 }
  0x1d   : > { %s1174_s3 = scalar_lea.hbm %s1482_s0, %s739_s28  ;;  %s128_s4 = sshll.u32 %s113_s27, 4  ;;  %s1176_s4 = int_to_ptr.vmem [resolvable:$true] %s128_s4 }
  0x1e   : > { %s970_s5 = scalar_lea.hbm %s1174_s3, %s1163_s24  ;;  %s974_s8 = scalar_lea.hbm %s1482_s0, 32000 }
  0x1f   : > { %p971_p12 = scmp.ne.s32.totalorder %s1174_s3, %s970_s5  ;;  %p975_p1 = scmp.lt.u32.totalorder %s1174_s3, %s1482_s0 }
  0x20   : > { %p976_p2 = scmp.lt.u32.totalorder %s974_s8, %s970_s5  ;;  %p978_p4 = scmp.lt.u32.totalorder %s970_s5, %s1174_s3 }
  0x21   : > { %p972_p13 = pnand %p971_p12, %p712_p11 }
  0x22   : > { %p977_p3 = por %p976_p2, %p975_p1 }
  0x23   : > { %p973_p0 = pneg %p972_p13 }
  0x24   : > { %p979_p5 = por %p978_p4, %p977_p3 }
  0x26   : > { %p980_p6 = pnand %p979_p5, %p973_p0 }
  0x28   : > { %983 = shalt.err (!%p980_p6)
}
  0x29   : > { %s984_s16 = scalar_lea.vmem %s1176_s4, %s1163_s24  ;;  %s1098_s20 = smov [#allocation2]  }
  0x2a   : > { %p985_p9 = scmp.ne.s32.totalorder %s1176_s4, %s984_s16  ;;  %s988_s21 = sshll.u32 %s1098_s20, 4  ;;  %s989_s21 = int_to_ptr.vmem [resolvable:$false] %s988_s21 }
  0x2b   : > { %s990_s22 = scalar_lea.vmem %s989_s21, 8192  ;;  %p991_p13 = scmp.lt.s32.totalorder %s1176_s4, %s989_s21 }
  0x2c   : > { %p986_p10 = pnand %p985_p9, %p712_p11  ;;  %p992_p1 = scmp.lt.s32.totalorder %s990_s22, %s984_s16 }
  0x2e   : > { %p987_p12 = pneg %p986_p10  ;;  %p993_p2 = por %p992_p1, %p991_p13 }
  0x30   : > { %p994_p3 = pnand %p993_p2, %p987_p12 }
  0x32   : > { %997 = shalt.err (!%p994_p3)
}
  0x33   : > { %s1099_s23 = smov 256   ;;  %s1100_s25 = smov 16  }
  0x34   : > { %134 = dma.hbm_to_vmem [thread:$0]  (%p712_p11), %s1174_s3, %s1163_s24, %s1176_s4, %s1166_s26, %s1099_s23, %s1099_s23, %s1100_s25  }
  0x35 PF: > { %p717_p0 = scmp.ge.s32.totalorder %s1064_s12, 1  ;;  %p136_p4 = scmp.lt.s32.totalorder %s1064_s12, 9 }
  0x37   : > { %p137_p5 = pnand %p717_p0, %p136_p4 }
  0x38   : > { %s1206_s27 = sand.u32 (!%p137_p5), 1, %s1056_s10  }
  0x39   : > { %140 = sbr.rel (%p137_p5) target bundleno = 395 (0x18b), region = 28  ;;  %s718_s28 = sshll.u32 (!%p137_p5), %s1206_s27, 8 }
  0x3a   : > { %s143_s29 = scalar_lea.sflag (!%p137_p5), [#allocation3], %s1206_s27  ;;  %s1210_s30 = scalar_lea.vmem (!%p137_p5), [#allocation2], %s718_s28 }
  0x40   : > { %1047 = dma.done.wait (%p1152_p7), %s143_s29, 4096  }
  0x41   : > { %1049 = vsyncadd (%p1152_p7), %s143_s29, 4294963200  ;;  %v225_v0 = vld [vmem:[%s1483_s1 + $0x80] sm:$0xff]  ;;  %v226_v1 = vld [vmem:[%s1483_s1 + $0x88] sm:$0xff]  ;;  %s719_s4 = sshll.u32 %s1206_s27, 7  ;;  %vm402_vm0 = vcmask 7168   ;;  %s721_s27 = sshll.u32 (%p1156_p8), %s1135_s13, 4 }
  0x42   : > { %v209_v2 = vld [vmem:[%s1483_s1] sm:$0xff]  ;;  %v823_v3 = vpack.c.bf16 %v226_v1, %v225_v0  ;;  %v210_v4 = vld [vmem:[%s1483_s1 + $0x8] sm:$0xff]  ;;  %v227_v5 = vld [vmem:[%s1483_s1 + $0x90] sm:$0xff]  ;;  %s1345_s5 = scalar_lea.vmem [#allocation4], %s719_s4   ;;  %s427_s6 = ssub.s32 (%p1156_p8), 125, %s721_s27 }
  0x43   : > { %v228_v6 = vld [vmem:[%s1483_s1 + $0x98] sm:$0xff]  ;;  %v825_v7 = vpack.c.bf16 %v210_v4, %v209_v2  ;;  %v211_v9 = vld [vmem:[%s1483_s1 + $0x10] sm:$0xff]  ;;  %v229_v11 = vld [vmem:[%s1483_s1 + $0xa0] sm:$0xff]  ;;  %p428_p7 = scmp.lt.s32.totalorder (%p1156_p8), %s427_s6, 16 }
  0x44   : > { %v827_v8 = vpack.c.bf16 %v228_v6, %v227_v5  ;;  %v212_v10 = vld [vmem:[%s1483_s1 + $0x18] sm:$0xff]  ;;  %824 = vmatprep.subr.bf16.mxu0 %v823_v3  ;;  %855 = vmatprep.subr.bf16.mxu1 %v823_v3  ;;  %v230_v12 = vld [vmem:[%s1483_s1 + $0xa8] sm:$0xff]  ;;  %v213_v15 = vld [vmem:[%s1483_s1 + $0x20] sm:$0xff] }
  0x45   : > { %826 = vmatpush3.bf16.msra.mxu0 %v825_v7  ;;  %863 = vmatpush3.bf16.msra.mxu1 %v825_v7  ;;  %v829_v13 = vpack.c.bf16 %v212_v10, %v211_v9  ;;  %v831_v14 = vpack.c.bf16 %v230_v12, %v229_v11  ;;  %v214_v16 = vld [vmem:[%s1483_s1 + $0x28] sm:$0xff]  ;;  %v231_v17 = vld [vmem:[%s1483_s1 + $0xb0] sm:$0xff]  ;;  %v232_v18 = vld [vmem:[%s1483_s1 + $0xb8] sm:$0xff] }
  0x46   : > { %828 = vmatprep.subr.bf16.mxu0 %v827_v8  ;;  %856 = vmatprep.subr.bf16.mxu1 %v827_v8  ;;  %v833_v19 = vpack.c.bf16 %v214_v16, %v213_v15  ;;  %v835_v20 = vpack.c.bf16 %v232_v18, %v231_v17  ;;  %v215_v21 = vld [vmem:[%s1483_s1 + $0x30] sm:$0xff]  ;;  %v216_v22 = vld [vmem:[%s1483_s1 + $0x38] sm:$0xff]  ;;  %v233_v23 = vld [vmem:[%s1483_s1 + $0xc0] sm:$0xff] }
  0x47   : > { %v234_v24 = vld [vmem:[%s1483_s1 + $0xc8] sm:$0xff]  ;;  %v837_v27 = vpack.c.bf16 %v216_v22, %v215_v21  ;;  %v217_v29 = vld [vmem:[%s1483_s1 + $0x40] sm:$0xff]  ;;  %v235_v31 = vld [vmem:[%s1483_s1 + $0xd0] sm:$0xff] }
  0x48   : > { %v178_v25 = vld [vmem:[%s1210_s30 + $0x8] sm:$0xff]  ;;  %v839_v28 = vpack.c.bf16 %v234_v24, %v233_v23  ;;  %v236_v32 = vld [vmem:[%s1483_s1 + $0xd8] sm:$0xff]  ;;  %v219_v35 = vld [vmem:[%s1483_s1 + $0x50] sm:$0xff] }
  0x49   : > { %830 = vmatpush3.bf16.msra.mxu0 %v829_v13  ;;  %864 = vmatpush3.bf16.msra.mxu1 %v829_v13  ;;  %v194_v26 = vld [vmem:[%s1210_s30 + $0x88] sm:$0xff]  ;;  %v843_v34 = vpack.c.bf16 %v236_v32, %v235_v31  ;;  %v220_v36 = vld [vmem:[%s1483_s1 + $0x58] sm:$0xff]  ;;  %v237_v37 = vld [vmem:[%s1483_s1 + $0xe0] sm:$0xff] }
  0x4a   : > { %832 = vmatprep.subr.bf16.mxu0 %v831_v14  ;;  %857 = vmatprep.subr.bf16.mxu1 %v831_v14  ;;  %v218_v30 = vld [vmem:[%s1483_s1 + $0x48] sm:$0xff]  ;;  %v845_v39 = vpack.c.bf16 %v220_v36, %v219_v35  ;;  %v221_v41 = vld [vmem:[%s1483_s1 + $0x60] sm:$0xff]  ;;  %v239_v43 = vld [vmem:[%s1483_s1 + $0xf0] sm:$0xff] }
  0x4b   : > { %305 = vmatprep.mubr.f32.mxu0 %v178_v25  ;;  %345 = vmatprep.mubr.f32.mxu1 %v194_v26  ;;  %v841_v33 = vpack.c.bf16 %v218_v30, %v217_v29  ;;  %v238_v38 = vld [vmem:[%s1483_s1 + $0xe8] sm:$0xff]  ;;  %v240_v44 = vld [vmem:[%s1483_s1 + $0xf8] sm:$0xff]  ;;  %v223_v47 = vld [vmem:[%s1483_s1 + $0x70] sm:$0xff] }
  0x4c   : > { %v847_v40 = vpack.c.bf16 %v238_v38, %v237_v37  ;;  %v222_v42 = vld [vmem:[%s1483_s1 + $0x68] sm:$0xff]  ;;  %v851_v46 = vpack.c.bf16 %v240_v44, %v239_v43  ;;  %v224_v48 = vld [vmem:[%s1483_s1 + $0x78] sm:$0xff]  ;;  %v177_v50 = vld [vmem:[%s1210_s30] sm:$0xff] }
  0x4d   : > { %834 = vmatpush3.bf16.msra.mxu0 %v833_v19  ;;  %865 = vmatpush3.bf16.msra.mxu1 %v833_v19  ;;  %v849_v45 = vpack.c.bf16 %v222_v42, %v221_v41  ;;  %v853_v49 = vpack.c.bf16 %v224_v48, %v223_v47  ;;  %v193_v51 = vld [vmem:[%s1210_s30 + $0x80] sm:$0xff]  ;;  %v180_v52 = vld [vmem:[%s1210_s30 + $0x18] sm:$0xff]  ;;  %v179_v54 = vld [vmem:[%s1210_s30 + $0x10] sm:$0xff] }
  0x4e   : > { %836 = vmatprep.subr.bf16.mxu0 %v835_v20  ;;  %858 = vmatprep.subr.bf16.mxu1 %v835_v20  ;;  %v196_v53 = vld [vmem:[%s1210_s30 + $0x98] sm:$0xff]  ;;  %v195_v55 = vld [vmem:[%s1210_s30 + $0x90] sm:$0xff]  ;;  %v182_v56 = vld [vmem:[%s1210_s30 + $0x28] sm:$0xff] }
  0x4f   : > { %v198_v57 = vld [vmem:[%s1210_s30 + $0xa8] sm:$0xff]  ;;  %v181_v58 = vld [vmem:[%s1210_s30 + $0x20] sm:$0xff]  ;;  %v184_v60 = vld [vmem:[%s1210_s30 + $0x38] sm:$0xff] }
  0x50   : > { %v197_v59 = vld [vmem:[%s1210_s30 + $0xa0] sm:$0xff]  ;;  %v200_v61 = vld [vmem:[%s1210_s30 + $0xb8] sm:$0xff]  ;;  %v183_v62 = vld [vmem:[%s1210_s30 + $0x30] sm:$0xff] }
  0x51   : > { %838 = vmatpush3.bf16.msra.mxu0 %v837_v27  ;;  %866 = vmatpush3.bf16.msra.mxu1 %v837_v27  ;;  %v199_v63 = vld [vmem:[%s1210_s30 + $0xb0] sm:$0xff]  ;;  %v186_v0 = vld [vmem:[%s1210_s30 + $0x48] sm:$0xff]  ;;  %v185_v2 = vld [vmem:[%s1210_s30 + $0x40] sm:$0xff] }
  0x52   : > { %840 = vmatprep.subr.bf16.mxu0 %v839_v28  ;;  %859 = vmatprep.subr.bf16.mxu1 %v839_v28  ;;  %v202_v1 = vld [vmem:[%s1210_s30 + $0xc8] sm:$0xff]  ;;  %v201_v3 = vld [vmem:[%s1210_s30 + $0xc0] sm:$0xff]  ;;  %v188_v4 = vld [vmem:[%s1210_s30 + $0x58] sm:$0xff] }
  0x53   : > { %v204_v5 = vld [vmem:[%s1210_s30 + $0xd8] sm:$0xff]  ;;  %v187_v6 = vld [vmem:[%s1210_s30 + $0x50] sm:$0xff]  ;;  %v190_v8 = vld [vmem:[%s1210_s30 + $0x68] sm:$0xff] }
  0x54   : > { %v203_v7 = vld [vmem:[%s1210_s30 + $0xd0] sm:$0xff]  ;;  %v206_v9 = vld [vmem:[%s1210_s30 + $0xe8] sm:$0xff]  ;;  %v189_v10 = vld [vmem:[%s1210_s30 + $0x60] sm:$0xff] }
  0x55   : > { %842 = vmatpush3.bf16.msra.mxu0 %v841_v33  ;;  %867 = vmatpush3.bf16.msra.mxu1 %v841_v33  ;;  %v205_v11 = vld [vmem:[%s1210_s30 + $0xe0] sm:$0xff]  ;;  %v192_v12 = vld [vmem:[%s1210_s30 + $0x78] sm:$0xff]  ;;  %v191_v14 = vld [vmem:[%s1210_s30 + $0x70] sm:$0xff] }
  0x56   : > { %844 = vmatprep.subr.bf16.mxu0 %v843_v34  ;;  %860 = vmatprep.subr.bf16.mxu1 %v843_v34  ;;  %v208_v13 = vld [vmem:[%s1210_s30 + $0xf8] sm:$0xff]  ;;  %v207_v15 = vld [vmem:[%s1210_s30 + $0xf0] sm:$0xff]  ;;  %s740_s30 = sshll.u32 (%p1156_p8), %s1135_s13, 7 }
  0x57   : > { %s1386_s18 = scalar_lea.vmem (%p1156_p8), %s1484_s2, %s740_s30  }
  0x59   : > { %846 = vmatpush3.bf16.msra.mxu0 %v845_v39  ;;  %868 = vmatpush3.bf16.msra.mxu1 %v845_v39 }
  0x5a   : > { %848 = vmatprep.subr.bf16.mxu0 %v847_v40  ;;  %861 = vmatprep.subr.bf16.mxu1 %v847_v40 }
  0x5d   : > { %850 = vmatpush3.bf16.msra.mxu0 %v849_v45  ;;  %869 = vmatpush3.bf16.msra.mxu1 %v849_v45 }
  0x5e   : > { %852 = vmatprep.subr.bf16.mxu0 %v851_v46  ;;  %862 = vmatprep.subr.bf16.mxu1 %v851_v46 }
  0x61   : > { %854 = vmatpush3.bf16.msra.mxu0 %v853_v49  ;;  %870 = vmatpush3.bf16.msra.mxu1 %v853_v49 }
  0x64   : > { %306 = vmatmul.mubr.f32.vlgmr.msra.gmra.mrb[0].mxu0 %v177_v50  ;;  %346 = vmatmul.mubr.f32.vlgmr.msra.gmra.mrb[0].mxu1 %v193_v51 }
  0x65   : > { %310 = vmatprep.mubr.f32.mxu0 %v180_v52  ;;  %350 = vmatprep.mubr.f32.mxu1 %v196_v53 }
  0x68   : > { %311 = vmatmul.mubr.f32.gmra.mrb[2].mxu0 %v179_v54  ;;  %351 = vmatmul.mubr.f32.gmra.mrb[2].mxu1 %v195_v55 }
  0x69   : > { %315 = vmatprep.mubr.f32.mxu0 %v182_v56  ;;  %355 = vmatprep.mubr.f32.mxu1 %v198_v57 }
  0x6c   : > { %316 = vmatmul.mubr.f32.gmra.mrb[4].mxu0 %v181_v58  ;;  %356 = vmatmul.mubr.f32.gmra.mrb[4].mxu1 %v197_v59 }
  0x6d   : > { %320 = vmatprep.mubr.f32.mxu0 %v184_v60  ;;  %360 = vmatprep.mubr.f32.mxu1 %v200_v61 }
  0x70   : > { %321 = vmatmul.mubr.f32.gmra.mrb[6].mxu0 %v183_v62  ;;  %361 = vmatmul.mubr.f32.gmra.mrb[6].mxu1 %v199_v63 }
  0x71   : > { %325 = vmatprep.mubr.f32.mxu0 %v186_v0  ;;  %365 = vmatprep.mubr.f32.mxu1 %v202_v1 }
  0x74   : > { %326 = vmatmul.mubr.f32.gmra.mrb[8].mxu0 %v185_v2  ;;  %366 = vmatmul.mubr.f32.gmra.mrb[8].mxu1 %v201_v3 }
  0x75   : > { %330 = vmatprep.mubr.f32.mxu0 %v188_v4  ;;  %370 = vmatprep.mubr.f32.mxu1 %v204_v5 }
  0x78   : > { %331 = vmatmul.mubr.f32.gmra.mrb[10].mxu0 %v187_v6  ;;  %371 = vmatmul.mubr.f32.gmra.mrb[10].mxu1 %v203_v7 }
  0x79   : > { %335 = vmatprep.mubr.f32.mxu0 %v190_v8  ;;  %375 = vmatprep.mubr.f32.mxu1 %v206_v9 }
  0x7c   : > { %336 = vmatmul.mubr.f32.gmra.mrb[12].mxu0 %v189_v10  ;;  %376 = vmatmul.mubr.f32.gmra.mrb[12].mxu1 %v205_v11 }
  0x7d   : > { %340 = vmatprep.mubr.f32.mxu0 %v192_v12  ;;  %380 = vmatprep.mubr.f32.mxu1 %v208_v13 }
  0x80   : > { %341 = vmatmul.mubr.f32.gmra.mrb[14].mxu0 %v191_v14  ;;  %381 = vmatmul.mubr.f32.gmra.mrb[14].mxu1 %v207_v15 }
 0x137   : > { %v775_v16 = vpop.f32.mrb[0].mxu0  ;;  %v799_v17 = vpop.f32.mrb[0].mxu1 }
 0x138   : > { %v776_v18 = vpop.f32.mrb[1].mxu0  ;;  %v800_v19 = vpop.f32.mrb[1].mxu1 }
 0x139   : > { %v777_v20 = vadd.f32 %v776_v18, %v775_v16  ;;  %v801_v21 = vadd.f32 %v800_v19, %v799_v17 }
 0x13b   : > { %v386_v22 = vmul.f32 %v777_v20, %v777_v20  ;;  %v394_v23 = vmul.f32 %v801_v21, %v801_v21  ;;  %v778_v24 = vpop.f32.mrb[2].mxu0  ;;  %v802_v25 = vpop.f32.mrb[2].mxu1 }
 0x13c   : > { %v779_v26 = vpop.f32.mrb[3].mxu0  ;;  %v803_v27 = vpop.f32.mrb[3].mxu1 }
 0x13d   : > { %403 = vst.msk [vmem:[%s1345_s5] sm:$0xff] %vm402_vm0, %v386_v22  ;;  %411 = vst.msk [vmem:[%s1345_s5 + $0x40] sm:$0xff] %vm402_vm0, %v394_v23  ;;  %v780_v28 = vadd.f32 %v779_v26, %v778_v24  ;;  %v804_v29 = vadd.f32 %v803_v27, %v802_v25 }
 0x13f   : > { %v387_v30 = vmul.f32 %v780_v28, %v780_v28  ;;  %v395_v31 = vmul.f32 %v804_v29, %v804_v29  ;;  %v781_v32 = vpop.f32.mrb[4].mxu0  ;;  %v805_v33 = vpop.f32.mrb[4].mxu1 }
 0x140   : > { %v782_v34 = vpop.f32.mrb[5].mxu0  ;;  %v806_v35 = vpop.f32.mrb[5].mxu1 }
 0x141   : > { %404 = vst.msk [vmem:[%s1345_s5 + $0x8] sm:$0xff] %vm402_vm0, %v387_v30  ;;  %412 = vst.msk [vmem:[%s1345_s5 + $0x48] sm:$0xff] %vm402_vm0, %v395_v31  ;;  %v783_v36 = vadd.f32 %v782_v34, %v781_v32  ;;  %v807_v37 = vadd.f32 %v806_v35, %v805_v33 }
 0x143   : > { %v388_v38 = vmul.f32 %v783_v36, %v783_v36  ;;  %v396_v39 = vmul.f32 %v807_v37, %v807_v37  ;;  %v784_v40 = vpop.f32.mrb[6].mxu0  ;;  %v808_v41 = vpop.f32.mrb[6].mxu1 }
 0x144   : > { %v785_v42 = vpop.f32.mrb[7].mxu0  ;;  %v809_v43 = vpop.f32.mrb[7].mxu1 }
 0x145   : > { %405 = vst.msk [vmem:[%s1345_s5 + $0x10] sm:$0xff] %vm402_vm0, %v388_v38  ;;  %413 = vst.msk [vmem:[%s1345_s5 + $0x50] sm:$0xff] %vm402_vm0, %v396_v39  ;;  %v786_v44 = vadd.f32 %v785_v42, %v784_v40  ;;  %v810_v45 = vadd.f32 %v809_v43, %v808_v41 }
 0x147   : > { %v389_v46 = vmul.f32 %v786_v44, %v786_v44  ;;  %v397_v47 = vmul.f32 %v810_v45, %v810_v45  ;;  %v787_v48 = vpop.f32.mrb[8].mxu0  ;;  %v811_v49 = vpop.f32.mrb[8].mxu1 }
 0x148   : > { %v788_v50 = vpop.f32.mrb[9].mxu0  ;;  %v812_v51 = vpop.f32.mrb[9].mxu1 }
 0x149   : > { %406 = vst.msk [vmem:[%s1345_s5 + $0x18] sm:$0xff] %vm402_vm0, %v389_v46  ;;  %414 = vst.msk [vmem:[%s1345_s5 + $0x58] sm:$0xff] %vm402_vm0, %v397_v47  ;;  %v789_v52 = vadd.f32 %v788_v50, %v787_v48  ;;  %v813_v53 = vadd.f32 %v812_v51, %v811_v49 }
 0x14b   : > { %v390_v54 = vmul.f32 %v789_v52, %v789_v52  ;;  %v398_v55 = vmul.f32 %v813_v53, %v813_v53  ;;  %v790_v56 = vpop.f32.mrb[10].mxu0  ;;  %v814_v57 = vpop.f32.mrb[10].mxu1 }
 0x14c   : > { %v791_v58 = vpop.f32.mrb[11].mxu0  ;;  %v815_v59 = vpop.f32.mrb[11].mxu1 }
 0x14d   : > { %407 = vst.msk [vmem:[%s1345_s5 + $0x20] sm:$0xff] %vm402_vm0, %v390_v54  ;;  %415 = vst.msk [vmem:[%s1345_s5 + $0x60] sm:$0xff] %vm402_vm0, %v398_v55  ;;  %v792_v60 = vadd.f32 %v791_v58, %v790_v56  ;;  %v816_v61 = vadd.f32 %v815_v59, %v814_v57 }
 0x14f   : > { %v391_v62 = vmul.f32 %v792_v60, %v792_v60  ;;  %v399_v63 = vmul.f32 %v816_v61, %v816_v61  ;;  %v793_v0 = vpop.f32.mrb[12].mxu0  ;;  %v817_v1 = vpop.f32.mrb[12].mxu1 }
 0x150   : > { %v794_v2 = vpop.f32.mrb[13].mxu0  ;;  %v818_v3 = vpop.f32.mrb[13].mxu1 }
 0x151   : > { %408 = vst.msk [vmem:[%s1345_s5 + $0x28] sm:$0xff] %vm402_vm0, %v391_v62  ;;  %416 = vst.msk [vmem:[%s1345_s5 + $0x68] sm:$0xff] %vm402_vm0, %v399_v63  ;;  %v795_v4 = vadd.f32 %v794_v2, %v793_v0  ;;  %v819_v5 = vadd.f32 %v818_v3, %v817_v1 }
 0x153   : > { %v392_v6 = vmul.f32 %v795_v4, %v795_v4  ;;  %v400_v7 = vmul.f32 %v819_v5, %v819_v5  ;;  %v796_v8 = vpop.f32.mrb[14].mxu0  ;;  %v820_v9 = vpop.f32.mrb[14].mxu1  ;;  %425 = sbr.rel (!%p1156_p8) target bundleno = 395 (0x18b), region = 36 }
 0x154   : > { %v797_v10 = vpop.f32.mrb[15].mxu0  ;;  %v821_v11 = vpop.f32.mrb[15].mxu1 }
 0x155   : > { %409 = vst.msk [vmem:[%s1345_s5 + $0x30] sm:$0xff] %vm402_vm0, %v392_v6  ;;  %417 = vst.msk [vmem:[%s1345_s5 + $0x70] sm:$0xff] %vm402_vm0, %v400_v7  ;;  %v798_v12 = vadd.f32 %v797_v10, %v796_v8  ;;  %v822_v13 = vadd.f32 %v821_v11, %v820_v9 }
 0x157   : > { %v393_v14 = vmul.f32 %v798_v12, %v798_v12  ;;  %v401_v15 = vmul.f32 %v822_v13, %v822_v13 }
 0x159   : > { %410 = vst.msk [vmem:[%s1345_s5 + $0x38] sm:$0xff] %vm402_vm0, %v393_v14  ;;  %418 = vst.msk [vmem:[%s1345_s5 + $0x78] sm:$0xff] %vm402_vm0, %v401_v15 }
 0x15a   : > { %s1497_s6 = smov (!%p428_p7, %s427_s6), 16 }
 0x15b   : > { %s722_s9 = sshll.u32 %s1497_s6, 7 }
 0x15c   : > { %p725_p11 = scmp.eq.s32.totalorder %s722_s9, 0 }
 0x15d   : > { %s1392_s19 = sshrl.u32 (!%p725_p11), %s1497_s6, 4 }
 0x15e   : > { %436 = sbr.rel (%p725_p11) target bundleno = 395 (0x18b), region = 40  ;;  %p726_p8 = scmp.le.s32.totalorder (!%p725_p11), %s1392_s19, 0 }
 0x165   : > { %658 = sbr.rel (%p726_p8) target bundleno = 374 (0x176), region = 122  ;;  %s1487_s13 = smov (!%p726_p8), %s1386_s18 }
 0x166   : > { %s1488_s15 = smov (!%p726_p8), %s1345_s5  ;;  %s1401_s16 = smov (!%p726_p8), 0  }
 0x167   : > { %s1403_s20 = smov (!%p726_p8), 0  }
 0x16c LB: >> { %v528_v16 = vld [vmem:[%s1072_s15] sm:$0xff]  ;;  %v530_v17 = vld [vmem:[%s1072_s15 + $0x8] sm:$0xff]  ;;  %v532_v18 = vld [vmem:[%s1072_s15 + $0x10] sm:$0xff]  ;;  %s560_s21 = sadd.s32 1, %s1076_s16  ;;  %s522_s20 = sadd.s32 1, %s1080_s20   ;;  %s1080_s20 = sphi %s1403_s20, %s522_s20   ;;  %s1076_s16 = sphi %s1401_s16, %s1489_s16   ;;  %s1072_s15 = sphi %s1488_s15, %s565_s15   ;;  %s1068_s13 = sphi %s1487_s13, %s566_s13  }
 0x16d   : >> { %529 = vst [vmem:[%s1068_s13] sm:$0xff] %v528_v16  ;;  %531 = vst [vmem:[%s1068_s13 + $0x8] sm:$0xff] %v530_v17  ;;  %v534_v19 = vld [vmem:[%s1072_s15 + $0x18] sm:$0xff]  ;;  %v536_v20 = vld [vmem:[%s1072_s15 + $0x20] sm:$0xff]  ;;  %p561_p6 = scmp.ge.s32.totalorder %s560_s21, %s1392_s19  ;;  %p521_p9 = scmp.ge.s32.totalorder %s522_s20, %s1392_s19 }
 0x16e   : >> { %533 = vst [vmem:[%s1068_s13 + $0x10] sm:$0xff] %v532_v18  ;;  %v538_v21 = vld [vmem:[%s1072_s15 + $0x28] sm:$0xff]  ;;  %535 = vst [vmem:[%s1068_s13 + $0x18] sm:$0xff] %v534_v19  ;;  %v540_v22 = vld [vmem:[%s1072_s15 + $0x30] sm:$0xff] }
 0x16f   : >> { %537 = vst [vmem:[%s1068_s13 + $0x20] sm:$0xff] %v536_v20  ;;  %539 = vst [vmem:[%s1068_s13 + $0x28] sm:$0xff] %v538_v21  ;;  %v542_v23 = vld [vmem:[%s1072_s15 + $0x38] sm:$0xff]  ;;  %v544_v24 = vld [vmem:[%s1072_s15 + $0x40] sm:$0xff]  ;;  %s1499_s21 = smov (%p561_p6, %s560_s21), 0  ;;  %524 = sbr.rel (!%p521_p9) target bundleno = 364 (0x16c), region = 128 }
 0x170   : >> { %541 = vst [vmem:[%s1068_s13 + $0x30] sm:$0xff] %v540_v22  ;;  %543 = vst [vmem:[%s1068_s13 + $0x38] sm:$0xff] %v542_v23  ;;  %v546_v25 = vld [vmem:[%s1072_s15 + $0x48] sm:$0xff]  ;;  %v548_v26 = vld [vmem:[%s1072_s15 + $0x50] sm:$0xff]  ;;  %s727_s22 = sshll.u32 %s1499_s21, 7  ;;  %s1489_s16 = smov %s1499_s21 }
 0x171   : >> { %545 = vst [vmem:[%s1068_s13 + $0x40] sm:$0xff] %v544_v24  ;;  %v550_v27 = vld [vmem:[%s1072_s15 + $0x58] sm:$0xff]  ;;  %547 = vst [vmem:[%s1068_s13 + $0x48] sm:$0xff] %v546_v25  ;;  %v552_v28 = vld [vmem:[%s1072_s15 + $0x60] sm:$0xff] }
 0x172   : >> { %549 = vst [vmem:[%s1068_s13 + $0x50] sm:$0xff] %v548_v26  ;;  %551 = vst [vmem:[%s1068_s13 + $0x58] sm:$0xff] %v550_v27  ;;  %v554_v29 = vld [vmem:[%s1072_s15 + $0x68] sm:$0xff]  ;;  %v556_v30 = vld [vmem:[%s1072_s15 + $0x70] sm:$0xff] }
 0x173   : >> { %553 = vst [vmem:[%s1068_s13 + $0x60] sm:$0xff] %v552_v28  ;;  %555 = vst [vmem:[%s1068_s13 + $0x68] sm:$0xff] %v554_v29  ;;  %v558_v31 = vld [vmem:[%s1072_s15 + $0x78] sm:$0xff]  ;;  %s565_s15 = scalar_lea.vmem %s1345_s5, %s727_s22 [#allocation4]  }
 0x174   : >> { %557 = vst [vmem:[%s1068_s13 + $0x70] sm:$0xff] %v556_v30  ;;  %559 = vst [vmem:[%s1068_s13 + $0x78] sm:$0xff] %v558_v31  ;;  %s566_s13 = scalar_lea.vmem %s1386_s18, %s727_s22  }
 0x176 PF: > { %s1461_s23 = sand.u32 15, %s1497_s6   ;;  %s741_s25 = sshll.u32 %s1392_s19, 7 }
 0x177   : > { %s571_s28 = scalar_lea.vmem %s1345_s5, %s741_s25 [#allocation4]   ;;  %s573_s29 = scalar_lea.vmem %s1386_s18, %s741_s25  }
 0x178   : > { %p732_p10 = scmp.le.s32.totalorder %s1461_s23, 0 }
 0x179   : > { %s1082_s24 = smov (!%p732_p10), %s573_s29   ;;  %s1086_s26 = smov (!%p732_p10), %s571_s28  }
 0x17a   : > { %672 = sbr.rel (%p732_p10) target bundleno = 395 (0x18b), region = 133  ;;  %s1090_s12 = smov (!%p732_p10), 0  }
 0x17b   : > { %s1094_s3 = smov (!%p732_p10), 0  }
 0x181 LB: >> { %v583_v32 = vld [vmem:[%s1088_s26] sm:$0xff]  ;;  %s585_s4 = sadd.s32 1, %s1092_s12  ;;  %s577_s3 = sadd.s32 1, %s1096_s3   ;;  %s1096_s3 = sphi %s1094_s3, %s577_s3   ;;  %s1092_s12 = sphi %s1090_s12, %s1091_s12   ;;  %s1088_s26 = sphi %s1086_s26, %s590_s26   ;;  %s1084_s24 = sphi %s1082_s24, %s591_s24  }
 0x182   : >> { %584 = vst [vmem:[%s1084_s24] sm:$0xff] %v583_v32  ;;  %p586_p12 = scmp.ge.s32.totalorder %s585_s4, %s1461_s23  ;;  %p576_p13 = scmp.ge.s32.totalorder %s577_s3, %s1461_s23 }
 0x184   : >> { %s1501_s4 = smov (%p586_p12, %s585_s4), 0  ;;  %579 = sbr.rel (!%p576_p13) target bundleno = 385 (0x181), region = 139 }
 0x185   : >> { %s733_s5 = sshll.u32 %s1501_s4, 3  ;;  %s1091_s12 = smov %s1501_s4  }
 0x186   : >> { %s590_s26 = scalar_lea.vmem %s571_s28, %s733_s5 [#allocation4]   ;;  %s591_s24 = scalar_lea.vmem %s573_s29, %s733_s5  }
 0x18b PF: > { %p12_p1 = scmp.ge.s32.totalorder %s1138_s14, 10   ;;  %s1490_s9 = smov %s1056_s10 }
 0x18c   : > { %s1491_s10 = smov %s1060_s11  ;;  %s1492_s11 = smov %s1148_s17 }
 0x18d   : > { %s1493_s12 = smov %s1138_s14  ;;  %14 = sbr.rel (!%p12_p1) target bundleno = 3 (0x3), region = 150 }
 0x194   :  { %607 = vsyncpa [#allocation3], 1 }
 0x195   :  { %609 = vsyncpa [#allocation3 + $0x1], 1 }

</bundles_post_ra>
